<compile_context>
chip_gen: v7x
topology: tpu7x:2x2x1
jax: 0.10.0
libtpu: 0.0.40
codegen_flags: <defaults>
</compile_context>

<pallas_src>
import functools

import jax
import jax.numpy as jnp
from jax.experimental import pallas as pl
from jax.experimental.pallas import tpu as pltpu

_LANE = 128          # vreg lane width; batch is padded to a multiple of this
_MAX_TILE_B = 512    # batch tile (lanes) per grid step
_IN_FEATURES = 4
_HIDDEN = 16
_OUT_FEATURES = 32


def _round_up(n, m):
    return ((n + m - 1) // m) * m


# --------------------------- Pallas kernel -----------------------------------

def _clinicnet_kernel(x_ref, w1_ref, b1_ref, w2_ref, b2_ref, o_ref):
    """Fused MLP in (features, batch) orientation.

    o = relu(W2^T @ relu(W1^T @ x + b1) + b2)   (dropout = identity, eval mode)
    bf16 MXU operands, f32 accumulation, f32 epilogues.
    """
    x = x_ref[...]                                                      # (4, TB) bf16
    h = jnp.dot(w1_ref[...], x, preferred_element_type=jnp.float32)    # (16, TB) f32
    h = jnp.maximum(h + b1_ref[...], 0.0)                              # bias + ReLU in f32
    h = h.astype(jnp.bfloat16)                                         # bf16 feed for MXU
    y = jnp.dot(w2_ref[...], h, preferred_element_type=jnp.float32)    # (32, TB) f32
    o_ref[...] = jnp.maximum(y + b2_ref[...], 0.0)                     # ReLU, f32 store


# --------------------------- wrapper ------------------------------------------

def clinicnet_forward(params, x):
    """x: (B, ...) with prod(...) == 4.  Returns (B, 32) float32."""
    b = x.shape[0]
    x2d = x.astype(jnp.float32).reshape(b, -1)          # x.view(B, -1)
    if x2d.shape[1] != _IN_FEATURES:
        raise ValueError(f"expected {_IN_FEATURES} flattened features, got {x2d.shape[1]}")

    # Pad batch to a multiple of the lane width, pick the tile, re-pad to the tile.
    b_pad = _round_up(max(b, 1), _LANE)
    tile_b = min(b_pad, _MAX_TILE_B)
    b_pad = _round_up(b_pad, tile_b)
    num_tiles = b_pad // tile_b

    # (features, batch): batch on the lane axis -> lane-dense DMAs and stores.
    xt = jnp.pad(x2d, ((0, b_pad - b), (0, 0))).T.astype(jnp.bfloat16)  # (4, b_pad)

    w1t, b1, w2t, b2 = params["w1t"], params["b1"], params["w2t"], params["b2"]

    flops = 2 * b_pad * (_IN_FEATURES * _HIDDEN + _HIDDEN * _OUT_FEATURES)
    bytes_accessed = (
        xt.size * 2                                    # bf16 input
        + b_pad * _OUT_FEATURES * 4                    # f32 output
        + (w1t.size + w2t.size) * 2                    # bf16 weights
        + (b1.size + b2.size) * 4                      # f32 biases
    )

    out_t = pl.pallas_call(
        _clinicnet_kernel,
        out_shape=jax.ShapeDtypeStruct((_OUT_FEATURES, b_pad), jnp.float32),
        grid=(num_tiles,),
        in_specs=[
            pl.BlockSpec((_IN_FEATURES, tile_b), lambda i: (0, i)),    # x tiles stream
            pl.BlockSpec((_HIDDEN, _IN_FEATURES), lambda i: (0, 0)),   # W1^T resident
            pl.BlockSpec((_HIDDEN, 1), lambda i: (0, 0)),              # b1 resident
            pl.BlockSpec((_OUT_FEATURES, _HIDDEN), lambda i: (0, 0)),  # W2^T resident
            pl.BlockSpec((_OUT_FEATURES, 1), lambda i: (0, 0)),        # b2 resident
        ],
        out_specs=pl.BlockSpec((_OUT_FEATURES, tile_b), lambda i: (0, i)),
        compiler_params=pltpu.CompilerParams(
            dimension_semantics=("parallel",),          # v7x: shard batch over 2 TCs
            vmem_limit_bytes=32 * 1024 * 1024,          # safe on v7x (64 MiB physical)
        ),
        cost_estimate=pl.CostEstimate(
            flops=flops, transcendentals=0, bytes_accessed=bytes_accessed),
    )(xt, w1t, b1, w2t, b2)

    # Back to row-major (B, 32), dropping the batch padding.
    return out_t.T[:b]


# --------------------------- parameter construction ---------------------------

def _linear_params(key, fan_in, fan_out):
    # PyTorch default nn.Linear init: U(-1/sqrt(fan_in), 1/sqrt(fan_in)).
    kw, kb = jax.random.split(key)
    bound = fan_in ** -0.5
    w = jax.random.uniform(kw, (fan_in, fan_out), jnp.float32, -bound, bound)
    b = jax.random.uniform(kb, (fan_out,), jnp.float32, -bound, bound)
    return w, b


def init_params(key):
    k1, k2 = jax.random.split(key)
    w1, b1 = _linear_params(k1, _IN_FEATURES, _HIDDEN)     # fc_1: Linear(4, 16)
    w2, b2 = _linear_params(k2, _HIDDEN, _OUT_FEATURES)    # fc_2: Linear(16, 32)
    return {
        # Kernel operands: transposed (features-out, features-in), bf16 weights.
        "w1t": w1.T.astype(jnp.bfloat16),        # (16, 4)
        "b1": b1.reshape(_HIDDEN, 1),            # (16, 1) f32 (lane-broadcast)
        "w2t": w2.T.astype(jnp.bfloat16),        # (32, 16)
        "b2": b2.reshape(_OUT_FEATURES, 1),      # (32, 1) f32
        # Full-precision copies for reference checks only.
        "w1_f32": w1, "b1_f32": b1, "w2_f32": w2, "b2_f32": b2,
    }


# --------------------------- main ----------------------------------------------

if __name__ == "__main__":
    key = jax.random.PRNGKey(0)
    params = init_params(key)
    fwd = jax.jit(functools.partial(clinicnet_forward, params))
    hi = jax.lax.Precision.HIGHEST

    def ref_f32(x):
        # Pure f32 reference (module semantics).
        x2d = x.astype(jnp.float32).reshape(x.shape[0], -1)
        h = jnp.maximum(jnp.dot(x2d, params["w1_f32"], precision=hi) + params["b1_f32"], 0.0)
        return jnp.maximum(jnp.dot(h, params["w2_f32"], precision=hi) + params["b2_f32"], 0.0)

    def ref_bf16(x):
        # Reference matching the kernel's bf16 operand rounding.
        x2d = (x.astype(jnp.float32).reshape(x.shape[0], -1)
               .astype(jnp.bfloat16).astype(jnp.float32))
        w1 = params["w1t"].astype(jnp.float32).T
        w2 = params["w2t"].astype(jnp.float32).T
        h = jnp.maximum(jnp.dot(x2d, w1, precision=hi) + params["b1_f32"], 0.0)
        h = h.astype(jnp.bfloat16).astype(jnp.float32)
        return jnp.maximum(jnp.dot(h, w2, precision=hi) + params["b2_f32"], 0.0)

    # Small batch (single grid step, heavy padding path).
    x_small = jax.random.normal(jax.random.fold_in(key, 1), (2, _IN_FEATURES), jnp.float32)
    out_small = jax.block_until_ready(fwd(x_small))
    assert out_small.shape == (2, _OUT_FEATURES), out_small.shape
    assert bool(jnp.all(jnp.isfinite(out_small)))
    assert bool(jnp.allclose(out_small, ref_bf16(x_small), atol=1e-2, rtol=1e-2))
    assert bool(jnp.allclose(out_small, ref_f32(x_small), atol=6e-2, rtol=6e-2))

    # Larger batch exercising multiple pipelined grid steps + tail padding.
    x_big = jax.random.normal(jax.random.fold_in(key, 2), (1030, _IN_FEATURES), jnp.float32)
    out_big = jax.block_until_ready(fwd(x_big))
    assert out_big.shape == (1030, _OUT_FEATURES), out_big.shape
    assert bool(jnp.all(jnp.isfinite(out_big)))
    assert bool(jnp.allclose(out_big, ref_bf16(x_big), atol=1e-2, rtol=1e-2))
    assert bool(jnp.allclose(out_big, ref_f32(x_big), atol=6e-2, rtol=6e-2))

    print("KERNEL_OK")
</pallas_src>

<mosaic_0001>
module attributes {stable_mosaic.version = 11 : i64} {
  func.func @_clinicnet_kernel(%arg0: i32, %arg1: memref<4x128xbf16, #tpu.memory_space<vmem>>, %arg2: memref<16x4xbf16, #tpu.memory_space<vmem>>, %arg3: memref<16x1xf32, #tpu.memory_space<vmem>>, %arg4: memref<32x16xbf16, #tpu.memory_space<vmem>>, %arg5: memref<32x1xf32, #tpu.memory_space<vmem>>, %arg6: memref<32x128xf32, #tpu.memory_space<vmem>>) attributes {dimension_semantics = [#tpu.dimension_semantics<parallel>], iteration_bounds = array<i64: 1>, scalar_prefetch = 0 : i64, scratch_operands = 0 : i64, tpu.core_type = #tpu.core_type<tc>, window_params = [{transform_indices = @transform_0, window_bounds = array<i64: 4, 128>}, {pipeline_mode = #tpu.pipeline_mode<synchronous>, transform_indices = @transform_1, window_bounds = array<i64: 16, 4>}, {pipeline_mode = #tpu.pipeline_mode<synchronous>, transform_indices = @transform_2, window_bounds = array<i64: 16, 1>}, {pipeline_mode = #tpu.pipeline_mode<synchronous>, transform_indices = @transform_3, window_bounds = array<i64: 32, 16>}, {pipeline_mode = #tpu.pipeline_mode<synchronous>, transform_indices = @transform_4, window_bounds = array<i64: 32, 1>}, {transform_indices = @transform_5, window_bounds = array<i64: 32, 128>}]} {
    %c0 = arith.constant 0 : index
    %c0_0 = arith.constant 0 : index
    %0 = vector.load %arg1[%c0, %c0_0] : memref<4x128xbf16, #tpu.memory_space<vmem>>, vector<4x128xbf16>
    %c0_1 = arith.constant 0 : index
    %c0_2 = arith.constant 0 : index
    %1 = vector.load %arg2[%c0_1, %c0_2] : memref<16x4xbf16, #tpu.memory_space<vmem>>, vector<16x4xbf16>
    %cst = arith.constant dense<0.000000e+00> : vector<16x128xf32>
    %2 = tpu.matmul %1, %0, %cst {dimension_numbers = #tpu.dot_dimension_numbers<[1], [0], [0], [1], [0, 0, 1, 1], [], []>} : vector<16x4xbf16>, vector<4x128xbf16>, vector<16x128xf32> -> vector<16x128xf32>
    %c0_3 = arith.constant 0 : index
    %c0_4 = arith.constant 0 : index
    %3 = vector.load %arg3[%c0_3, %c0_4] : memref<16x1xf32, #tpu.memory_space<vmem>>, vector<16x1xf32>
    %4 = vector.broadcast %3 : vector<16x1xf32> to vector<16x128xf32>
    %5 = arith.addf %2, %4 : vector<16x128xf32>
    %cst_5 = arith.constant 0.000000e+00 : f32
    %6 = vector.broadcast %cst_5 : f32 to vector<16x128xf32>
    %7 = arith.maximumf %5, %6 : vector<16x128xf32>
    %8 = arith.truncf %7 : vector<16x128xf32> to vector<16x128xbf16>
    %c0_6 = arith.constant 0 : index
    %c0_7 = arith.constant 0 : index
    %9 = vector.load %arg4[%c0_6, %c0_7] : memref<32x16xbf16, #tpu.memory_space<vmem>>, vector<32x16xbf16>
    %cst_8 = arith.constant dense<0.000000e+00> : vector<32x128xf32>
    %10 = tpu.matmul %9, %8, %cst_8 {dimension_numbers = #tpu.dot_dimension_numbers<[1], [0], [0], [1], [0, 0, 1, 1], [], []>} : vector<32x16xbf16>, vector<16x128xbf16>, vector<32x128xf32> -> vector<32x128xf32>
    %c0_9 = arith.constant 0 : index
    %c0_10 = arith.constant 0 : index
    %11 = vector.load %arg5[%c0_9, %c0_10] : memref<32x1xf32, #tpu.memory_space<vmem>>, vector<32x1xf32>
    %12 = vector.broadcast %11 : vector<32x1xf32> to vector<32x128xf32>
    %13 = arith.addf %10, %12 : vector<32x128xf32>
    %cst_11 = arith.constant 0.000000e+00 : f32
    %14 = vector.broadcast %cst_11 : f32 to vector<32x128xf32>
    %15 = arith.maximumf %13, %14 : vector<32x128xf32>
    %c0_12 = arith.constant 0 : index
    %c0_13 = arith.constant 0 : index
    %16 = vector.load %arg6[%c0_12, %c0_13] : memref<32x128xf32, #tpu.memory_space<vmem>>, vector<32x128xf32>
    tpu.vector_store %arg6[%c0_12, %c0_13], %15 {strides = array<i32>} : memref<32x128xf32, #tpu.memory_space<vmem>>, vector<32x128xf32>,
    return
  }
  func.func @transform_0(%arg0: i32) -> (i32, i32) {
    %c0_i32 = arith.constant 0 : i32
    %c0_i32_0 = arith.constant 0 : i32
    return %c0_i32, %arg0 : i32, i32
  }
  func.func @transform_1(%arg0: i32) -> (i32, i32) {
    %c0_i32 = arith.constant 0 : i32
    %c0_i32_0 = arith.constant 0 : i32
    %c0_i32_1 = arith.constant 0 : i32
    return %c0_i32, %c0_i32_0 : i32, i32
  }
  func.func @transform_2(%arg0: i32) -> (i32, i32) {
    %c0_i32 = arith.constant 0 : i32
    %c0_i32_0 = arith.constant 0 : i32
    %c0_i32_1 = arith.constant 0 : i32
    return %c0_i32, %c0_i32_0 : i32, i32
  }
  func.func @transform_3(%arg0: i32) -> (i32, i32) {
    %c0_i32 = arith.constant 0 : i32
    %c0_i32_0 = arith.constant 0 : i32
    %c0_i32_1 = arith.constant 0 : i32
    return %c0_i32, %c0_i32_0 : i32, i32
  }
  func.func @transform_4(%arg0: i32) -> (i32, i32) {
    %c0_i32 = arith.constant 0 : i32
    %c0_i32_0 = arith.constant 0 : i32
    %c0_i32_1 = arith.constant 0 : i32
    return %c0_i32, %c0_i32_0 : i32, i32
  }
  func.func @transform_5(%arg0: i32) -> (i32, i32) {
    %c0_i32 = arith.constant 0 : i32
    %c0_i32_0 = arith.constant 0 : i32
    return %c0_i32, %arg0 : i32, i32
  }
}

</mosaic_0001>

<bundles_post_ra>
// kernel: clinicnet_forward.1
= control target key start
LH: loop header
LB: loop body
LE: loop exit
PB: predicated region body
PF: predicated region fallthrough
CT: control target
= control target key end

     0   :  { %10 = vsyncpa [#allocation3], 0  ;;  %s399_s0 = inlined_call_operand.vmem [shape: bf16[4,128], index: 0, kind: input, shape index: {}]   ;;  %s400_s1 = inlined_call_operand.vmem [shape: bf16[16,4], index: 1, kind: input, shape index: {}]   ;;  %s401_s2 = inlined_call_operand.hbm [shape: f32[16,1], index: 2, kind: input, shape index: {}]   ;;  %s402_s3 = inlined_call_operand.vmem [shape: bf16[32,16], index: 3, kind: input, shape index: {}]   ;;  %s403_s4 = inlined_call_operand.hbm [shape: f32[32,1], index: 4, kind: input, shape index: {}]   ;;  %s404_s5 = inlined_call_operand.vmem [shape: f32[32,128], index: 5, kind: output, shape index: {}]  }
   0x1   :  { %11 = vsyncpa [#allocation5], 0  ;;  %s312_s18 = smov [#allocation2]   ;;  %s264_s22 = scalar_lea.hbm %s401_s2, 256 }
   0x2   :  { %s21_s19 = sshll.u32 %s312_s18, 4  ;;  %p265_p0 = scmp.ne.s32.totalorder %s401_s2, %s264_s22  ;;  %s22_s19 = int_to_ptr.vmem [resolvable:$true] %s21_s19 }
   0x3   :  { %p268_p1 = scmp.lt.u32.totalorder %s264_s22, %s401_s2 }
   0x5   :  { %p270_p2 = pnand %p268_p1, %p265_p0 }
   0x7   :  { %273 = shalt.err (!%p270_p2)
}
   0x8   :  { %s274_s27 = scalar_lea.vmem %s22_s19, 256  ;;  %p279_p4 = scmp.lt.s32.totalorder %s22_s19, %s22_s19 }
   0x9   :  { %p275_p3 = scmp.ne.s32.totalorder %s22_s19, %s274_s27  ;;  %p280_p5 = scmp.lt.s32.totalorder %s274_s27, %s274_s27 }
   0xb   :  { %p281_p6 = por %p280_p5, %p279_p4 }
   0xd   :  { %p282_p7 = pnand %p281_p6, %p275_p3 }
   0xf   :  { %285 = shalt.err (!%p282_p7)
}
  0x10   :  { %s313_s28 = smov 128   ;;  %s314_s29 = smov 8  }
  0x11   :  { %27 = dma.hbm_to_vmem [thread:$0]  %s401_s2, 256, %s22_s19, [#allocation3], %s313_s28, %s313_s28, %s314_s29  }
  0x12   :  { %s315_s7 = smov [#allocation4]   ;;  %s286_s11 = scalar_lea.hbm %s403_s4, 512 }
  0x13   :  { %s35_s8 = sshll.u32 %s315_s7, 4  ;;  %p287_p8 = scmp.ne.s32.totalorder %s403_s4, %s286_s11  ;;  %s36_s8 = int_to_ptr.vmem [resolvable:$true] %s35_s8 }
  0x14   :  { %p290_p9 = scmp.lt.u32.totalorder %s286_s11, %s403_s4 }
  0x16   :  { %p292_p10 = pnand %p290_p9, %p287_p8 }
  0x18   :  { %295 = shalt.err (!%p292_p10)
}
  0x19   :  { %s296_s16 = scalar_lea.vmem %s36_s8, 512  ;;  %p301_p12 = scmp.lt.s32.totalorder %s36_s8, %s36_s8 }
  0x1a   :  { %p297_p11 = scmp.ne.s32.totalorder %s36_s8, %s296_s16  ;;  %p302_p13 = scmp.lt.s32.totalorder %s296_s16, %s296_s16 }
  0x1c   :  { %p303_p0 = por %p302_p13, %p301_p12 }
  0x1e   :  { %p304_p1 = pnand %p303_p0, %p297_p11 }
  0x20   :  { %307 = shalt.err (!%p304_p1)
}
  0x21   :  { %41 = dma.hbm_to_vmem [thread:$0]  %s403_s4, 512, %s36_s8, [#allocation5], %s313_s28, %s313_s28, %s314_s29  }
  0x22   :  { %308 = dma.done.wait [#allocation3], 256  }
  0x23   :  { %309 = vsyncadd [#allocation3], 4294967040 }
  0x24   :  { %310 = dma.done.wait [#allocation5], 512  }
  0x25   :  { %311 = vsyncadd [#allocation5], 4294966784  ;;  %v316_v0 = vmov 0.0   ;;  %vm317_vm0 = vmmov 0   ;;  %v318_v1 = vmov 0   ;;  %vm73_vm1 = vcmask 1041408  }
  0x26   :  { %240 = vmatprep.subr.bf16.mxu0 %v316_v0  ;;  %242 = vmatprep.mubr.msk.bf16.mxu0 %vm317_vm0, %v316_v0  ;;  %v49_v2 = vld [vmem:[%s399_s0] sm:$0x3]  ;;  %vm69_vm2 = vcmask 31744   ;;  %v53_v6 = vld [vmem:[#allocation2 + $0x8] sm:$0xff]  ;;  %vm159_vm3 = vcmask 130048   ;;  %v125_v9 = vld [vmem:[#allocation4] sm:$0xff] }
  0x27   :  { %259 = vset.pattern.permute.xlu0 %v318_v1  ;;  %260 = vset.pattern.permute.xlu1 %v318_v1  ;;  %v75_v3 = vsel %vm73_vm1, %v49_v2, 0  ;;  %v261_v4 = vld [vmem:[%s400_s1] sm:$0xff]   ;;  %v126_v10 = vld [vmem:[#allocation4 + $0x8] sm:$0xff]  ;;  %v128_v11 = vld [vmem:[#allocation4 + $0x18] sm:$0xff] }
  0x28   :  { %v52_v5 = vld [vmem:[#allocation2] sm:$0xff]  ;;  %241 = vmatpush3.bf16.msra.mxu0 %v75_v3  ;;  %131 = vperm.xlu1 %260, %v125_v9   ;;  %v263_v23 = vld [vmem:[%s402_s3 + $0x8] sm:$0xff]  }
  0x29   :  { %56 = vperm.xlu0 %259, %v52_v5   ;;  %v127_v7 = vld [vmem:[#allocation4 + $0x10] sm:$0xff] }
  0x2a   :  { %v262_v8 = vld [vmem:[%s402_s3] sm:$0xff]  }
  0x2b   :  { %243 = vmatmul.mubr.msk.bf16.vlgmr.msra.gmra.mrb[0].mxu0 %vm69_vm2, %v261_v4  ;;  %248 = vmatprep.mubr.msk.bf16.mxu1 %vm159_vm3, %v262_v8 }
  0x2c   :  { %136 = vperm.xlu1 %260, %v126_v10  }
  0x2d   :  { %61 = vperm.xlu0 %259, %v53_v6  }
  0x30   :  { %146 = vperm.xlu1 %260, %v128_v11  }
  0x31   :  { %141 = vperm.xlu0 %259, %v127_v7  }
  0xa7   :  { %v132_v24 = vpop.permute.xlu1 %131 }
  0xa8   :  { %v57_v12 = vpop.permute.xlu0 %56 }
  0xab   :  { %v137_v25 = vpop.permute.xlu1 %136 }
  0xac   :  { %v62_v16 = vpop.permute.xlu0 %61 }
  0xaf   :  { %v147_v30 = vpop.permute.xlu1 %146 }
  0xb0   :  { %v142_v26 = vpop.permute.xlu0 %141 }
  0xfe   :  { %v111_v13 = vpop.f32.mrb[0].mxu0 }
  0xff   :  { %v112_v14 = vadd.f32 %v111_v13, %v57_v12  ;;  %v244_v15 = vpop.f32.mrb[1].mxu0 }
 0x100   :  { %v114_v17 = vpop.f32.mrb[2].mxu0 }
 0x101   :  { %v115_v18 = vadd.f32 %v114_v17, %v62_v16  ;;  %v245_v19 = vpop.f32.mrb[3].mxu0  ;;  %v118_v20 = vmax.f32 %v112_v14, 0.0 }
 0x103   :  { %v119_v21 = vmax.f32 %v115_v18, 0.0 }
 0x105   :  { %v120_v22 = vpack.c.bf16 %v119_v21, %v118_v20 }
 0x107   :  { %246 = vmatprep.subr.bf16.mxu1 %v120_v22 }
 0x108   :  { %247 = vmatpush3.bf16.msra.mxu1 %v120_v22 }
 0x10b   :  { %249 = vmatmul.mubr.msk.bf16.vlgmr.msra.gmra.mrb[0].mxu1 %vm159_vm3, %v263_v23 }
 0x1de   :  { %v250_v27 = vpop.f32.mrb[0].mxu1 }
 0x1df   :  { %v209_v28 = vadd.f32 %v250_v27, %v142_v26  ;;  %v200_v29 = vpop.f32.mrb[1].mxu1 }
 0x1e0   :  { %v201_v31 = vadd.f32 %v200_v29, %v132_v24  ;;  %v251_v32 = vpop.f32.mrb[2].mxu1 }
 0x1e1   :  { %v217_v33 = vmax.f32 %v209_v28, 0.0  ;;  %v212_v34 = vadd.f32 %v251_v32, %v147_v30  ;;  %v203_v35 = vpop.f32.mrb[3].mxu1 }
 0x1e2   :  { %v215_v36 = vmax.f32 %v201_v31, 0.0  ;;  %v204_v37 = vadd.f32 %v203_v35, %v137_v25 }
 0x1e3   :  { %221 = vst [vmem:[%s404_s5 + $0x10] sm:$0xff] %v217_v33  ;;  %v218_v38 = vmax.f32 %v212_v34, 0.0 }
 0x1e4   :  { %219 = vst [vmem:[%s404_s5] sm:$0xff] %v215_v36  ;;  %v216_v39 = vmax.f32 %v204_v37, 0.0 }
 0x1e5   :  { %222 = vst [vmem:[%s404_s5 + $0x18] sm:$0xff] %v218_v38 }
 0x1e6   :  { %220 = vst [vmem:[%s404_s5 + $0x8] sm:$0xff] %v216_v39 }
 0x1e7   :  { %227 = vsyncpa [#allocation3], 1 }
 0x1e8   :  { %228 = vsyncpa [#allocation5], 1 }

</bundles_post_ra>
